<compile_context>
chip_gen: v7x
topology: tpu7x:2x2x1
jax: 0.10.0
libtpu: 0.0.40
codegen_flags: <defaults>
</compile_context>

<pallas_src>
import functools

import jax
import jax.numpy as jnp
from jax.experimental import pallas as pl
from jax.experimental.pallas import tpu as pltpu


def _round_up(x, m):
    return (x + m - 1) // m * m


def _vmem_capacity_bytes():
    try:
        return int(pltpu.get_tpu_info().vmem_capacity_bytes)
    except Exception:
        return 64 * 1024 * 1024       # conservative default (v7x per-core VMEM)


# ---------------------------------------------------------------------------
# Pallas kernel
#   acc[m, t] = sum_d q[m, d] * E[t, d]        (MXU, f32 accumulate)
#   band=True : fused skew -> out[s, r, c] = acc[row(s,r), c + L - r]  (pltpu.roll)
#   band=False: store full rows, overwrite static sentinel column with -100
# ---------------------------------------------------------------------------
def _rel_scores_kernel(q_ref, e_ref, o_ref, *, seq_len, sentinel_col, band,
                       row_tiled):
    ts, tr, d = q_ref.shape            # (batch tile, row tile, D) -- head squeezed
    w_e = e_ref.shape[0]
    out_w = o_ref.shape[-1]
    # Fold the batch tile into the MXU M dimension (tr % 8 == 0 or ts == 1, so the
    # flatten is a pure sublane-major merge with no relayout).
    q = q_ref[...].reshape(ts * tr, d)
    acc = jax.lax.dot_general(
        q, e_ref[...],
        dimension_numbers=(((1,), (1,)), ((), ())),
        preferred_element_type=jnp.float32)        # (ts*tr, w_e) f32

    if band:
        # Fused band ("skew") extraction: we need out[r, c] = acc[r, c + L - r].
        # Roll row j of the tile by (w_e - L) + j (+ r0 when row-tiled) lanes on the
        # XLU; lane c then holds acc[r, (c + L - r) mod w_e] and the kept lanes
        # c < L never wrap (indices stay in [1, 2L-1] < w_e).
        base = w_e - seq_len
        for s in range(ts):            # static python loop, ts is small
            blk = acc[s * tr:(s + 1) * tr, :]
            rolled = pltpu.roll(blk, shift=base, axis=1, stride=1, stride_axis=0)
            if row_tiled:
                # extra uniform roll by the tile's global starting row
                rolled = pltpu.roll(rolled, shift=pl.program_id(2) * tr, axis=1)
            o_ref[s, :, :] = rolled[:, :out_w].astype(o_ref.dtype)
    else:
        o_ref[...] = acc.reshape(ts, tr, w_e).astype(o_ref.dtype)
        if sentinel_col is not None:
            # Static single-column overwrite (replaces iota + compare + select).
            o_ref[:, :, sentinel_col:sentinel_col + 1] = jnp.full(
                (ts, tr, 1), -100.0, o_ref.dtype)


def _choose_tiles(sz_b, L, w_e, out_w, d, in_bytes, out_bytes, cap):
    """Pick (ts, tr): batch elements x sequence rows per grid step.

    Per-step VMEM footprint (q and out double buffered, f32 acc single, E counted
    off the top):  2*ts*tr*d*in + 2*ts*tr*out_w*out + ts*tr*w_e*4.
    Target ~55% of device VMEM so double buffering keeps headroom on v7x (64 MiB)
    and v5e (raised scoped limit), while v6e (128 MiB) gets proportionally larger
    tiles to amortize the ~0.35 us per-grid-step overhead.
    """
    budget = int(cap * 0.55) - 2 * w_e * d * in_bytes
    budget = max(budget, 1 << 21)

    def step_bytes(ts, tr):
        return ts * tr * (2 * d * in_bytes + 2 * out_w * out_bytes + 4 * w_e)

    tr = L
    while step_bytes(1, tr) > budget and tr % 16 == 0:
        tr //= 2
    ts = 1
    for cand in range(2, sz_b + 1):
        if tr % 8 != 0:                # flatten/slice needs sublane-aligned rows
            break
        if sz_b % cand:
            continue
        if step_bytes(cand, tr) <= budget:
            ts = cand
    return ts, tr


def _rel_scores(q4, E, *, out_w, sentinel_col, band, seq_len, out_dtype):
    """q4: (sz_b, n_head, L, D), E: (n_head, W_e, D) -> (sz_b, n_head, L, out_w)."""
    sz_b, n_head, L, D = q4.shape
    W_e = E.shape[1]
    in_b = jnp.dtype(q4.dtype).itemsize
    out_b = jnp.dtype(out_dtype).itemsize
    cap = _vmem_capacity_bytes()
    ts, tr = _choose_tiles(sz_b, L, W_e, out_w, D, in_b, out_b, cap)
    grid = (n_head, sz_b // ts, L // tr)
    kernel = functools.partial(
        _rel_scores_kernel, seq_len=seq_len, sentinel_col=sentinel_col,
        band=band, row_tiled=(L // tr) > 1)
    return pl.pallas_call(
        kernel,
        out_shape=jax.ShapeDtypeStruct((sz_b, n_head, L, out_w), out_dtype),
        grid=grid,
        in_specs=[
            # q block: ts batch elements x tr rows of one head (head dim squeezed).
            pl.BlockSpec((ts, None, tr, D), lambda h, s, r: (s, h, r, 0)),
            # E block: depends only on the OUTERMOST grid axis -> VMEM resident
            # across all inner (s, r) steps.
            pl.BlockSpec((None, W_e, D), lambda h, s, r: (h, 0, 0)),
        ],
        out_specs=pl.BlockSpec((ts, None, tr, out_w), lambda h, s, r: (s, h, r, 0)),
        compiler_params=pltpu.CompilerParams(
            dimension_semantics=("parallel", "parallel", "parallel"),
            vmem_limit_bytes=int(cap * 0.9)),
    )(q4, E)


# ---------------------------------------------------------------------------
# Module wrapper (deterministic parameter init, same shapes as the torch __init__)
# ---------------------------------------------------------------------------
class RelativeSelfAttentionModule:
    def __init__(self, embedding_dim, n_head, seq_len, use_masks, key,
                 compute_dtype=jnp.bfloat16, out_dtype=jnp.float32):
        self.embedding_dim = embedding_dim
        self.n_head = n_head
        self.seq_len = seq_len
        self.use_masks = use_masks
        self.compute_dtype = compute_dtype
        self.out_dtype = out_dtype
        D, L = embedding_dim, seq_len
        if use_masks:
            self.e = jax.random.normal(key, (n_head * L, D), jnp.float32)
            e_h = self.e.reshape(n_head, L, D)
            zrow = jnp.zeros((n_head, 1, D), jnp.float32)
            # Cached (input independent): sentinel column fused as a zero E row.
            self._E_append = jnp.concatenate([e_h, zrow], 1).astype(compute_dtype)
            self._E_prepend = jnp.concatenate([zrow, e_h], 1).astype(compute_dtype)
        else:
            k1, k2 = jax.random.split(key)
            self.e1 = jax.random.normal(k1, (n_head * L, D), jnp.float32)
            self.e2 = jax.random.normal(k2, (n_head * L, D), jnp.float32)
            e1_h = self.e1.reshape(n_head, L, D)
            e2_h = self.e2.reshape(n_head, L, D)
            # Combined table for the fused band extraction:
            #   E[0] = 0, E[1:L+1] = e2, E[L+1:2L] = e1[1:], zero-padded to a
            #   lane-dense multiple of 128.   band[r, c] = q[r] . E[c + L - r]
            #     c <= r -> e2[c + L - 1 - r],    c > r -> e1[c - r]
            W = _round_up(2 * L, 128)
            zrow = jnp.zeros((n_head, 1, D), jnp.float32)
            pad = jnp.zeros((n_head, W - 2 * L, D), jnp.float32)
            self._E_band = jnp.concatenate(
                [zrow, e2_h, e1_h[:, 1:, :], pad], axis=1).astype(compute_dtype)

    def _masked_table(self, L, flipped):
        if L == self.seq_len:
            return (self._E_append, L) if flipped else (self._E_prepend, 0)
        # len_q != seq_len: rebuild for this length (torch slices e per call).
        D = self.embedding_dim
        e_h = self.e[: self.n_head * L, :].reshape(self.n_head, L, D)
        zrow = jnp.zeros((self.n_head, 1, D), self.e.dtype)
        if flipped:
            return jnp.concatenate([e_h, zrow], 1).astype(self.compute_dtype), L
        return jnp.concatenate([zrow, e_h], 1).astype(self.compute_dtype), 0

    def __call__(self, q, flipped_masks):
        B, L, D = q.shape
        n_head = self.n_head
        assert B % n_head == 0
        sz_b = B // n_head
        # (B, L, D) -> (sz_b, n_head, L, D) is a free reshape (b = s*n_head + h).
        q4 = q.reshape(sz_b, n_head, L, D).astype(self.compute_dtype)

        if self.use_masks:
            E, sentinel = self._masked_table(L, flipped_masks)
            # Kernel emits the already-concatenated (L, L+1) rows with the -100
            # column fused.  Width stays exactly L+1 so the (B,L,L+1)->(B,L+1,L)
            # reshape below is a free row-major-identical view; only the row-drop
            # slice costs a pass (kept in XLA to reproduce torch's exact wrapped
            # values below the diagonal).
            P = _rel_scores(q4, E, out_w=L + 1, sentinel_col=sentinel, band=False,
                            seq_len=L, out_dtype=self.out_dtype)
            P = P.reshape(B, L + 1, L)
            return P[:, :L, :] if flipped_masks else P[:, 1:, :]
        else:
            # torch's .view in this branch requires len_q == seq_len.
            assert L == self.seq_len
            # Skew + triangular masks + add are fully fused: the kernel writes the
            # L-wide band directly (no XLA epilogue beyond a free reshape).
            out = _rel_scores(q4, self._E_band, out_w=L, sentinel_col=None,
                              band=True, seq_len=L, out_dtype=self.out_dtype)
            return out.reshape(B, L, L)


# ---------------------------------------------------------------------------
# Pure-JAX reference mirroring the PyTorch forward (same bf16 input rounding)
# ---------------------------------------------------------------------------
def _reference(module, q, flipped_masks):
    B, L, D = q.shape
    n_head = module.n_head
    sz_b = B // n_head
    cdt = module.compute_dtype
    qf = q.astype(cdt).astype(jnp.float32)

    def skew_append(rel):
        pad = jnp.full((B, L, 1), -100.0, rel.dtype)
        return jnp.concatenate([rel, pad], axis=2).reshape(B, L + 1, L)[:, :L, :]

    def skew_prepend(rel):
        pad = jnp.full((B, L, 1), -100.0, rel.dtype)
        return jnp.concatenate([pad, rel], axis=2).reshape(B, L + 1, L)[:, 1:, :]

    if module.use_masks:
        e = module.e[: n_head * L, :].reshape(n_head, L, D)
        e = e.astype(cdt).astype(jnp.float32)
        e_full = jnp.tile(e, (sz_b, 1, 1))            # e_full[b] = e[b % n_head]
        rel = jnp.einsum('bld,bmd->blm', qf, e_full)
        return skew_append(rel) if flipped_masks else skew_prepend(rel)
    else:
        e1 = jnp.tile(module.e1.reshape(n_head, L, D), (sz_b, 1, 1))
        e2 = jnp.tile(module.e2.reshape(n_head, L, D), (sz_b, 1, 1))
        e1 = e1.astype(cdt).astype(jnp.float32)
        e2 = e2.astype(cdt).astype(jnp.float32)
        s1 = skew_append(jnp.einsum('bld,bmd->blm', qf, e1))
        s2 = skew_prepend(jnp.einsum('bld,bmd->blm', qf, e2))
        i = jnp.arange(L)[:, None]
        j = jnp.arange(L)[None, :]
        # masks_down zeroes j <= i ; masks_up zeroes j > i
        return (jnp.where((j > i)[None], s1, 0.0)
                + jnp.where((j <= i)[None], s2, 0.0))


if __name__ == "__main__":
    embedding_dim, n_head, seq_len, sz_b = 32, 2, 8, 2
    key = jax.random.PRNGKey(0)
    kq, kp1, kp2 = jax.random.split(key, 3)

    q = jax.random.normal(kq, (sz_b * n_head, seq_len, embedding_dim), jnp.float32)

    mod_masked = RelativeSelfAttentionModule(embedding_dim, n_head, seq_len, True, kp1)
    mod_unmasked = RelativeSelfAttentionModule(embedding_dim, n_head, seq_len, False, kp2)

    out_a = jax.block_until_ready(mod_masked(q, flipped_masks=True))
    out_b = jax.block_until_ready(mod_masked(q, flipped_masks=False))
    out_c = jax.block_until_ready(mod_unmasked(q, flipped_masks=True))

    ref_a = _reference(mod_masked, q, True)
    ref_b = _reference(mod_masked, q, False)
    ref_c = _reference(mod_unmasked, q, True)

    assert out_a.shape == (sz_b * n_head, seq_len, seq_len)
    assert out_b.shape == (sz_b * n_head, seq_len, seq_len)
    assert out_c.shape == (sz_b * n_head, seq_len, seq_len)
    assert jnp.allclose(out_a, ref_a, rtol=2e-2, atol=2e-2)
    assert jnp.allclose(out_b, ref_b, rtol=2e-2, atol=2e-2)
    assert jnp.allclose(out_c, ref_c, rtol=2e-2, atol=2e-2)

    print("KERNEL_OK")
</pallas_src>

<mosaic_0001>
module attributes {stable_mosaic.version = 11 : i64} {
  func.func @_rel_scores_kernel(%arg0: i32, %arg1: i32, %arg2: i32, %arg3: memref<2x1x8x32xbf16, #tpu.memory_space<vmem>>, %arg4: memref<1x9x32xbf16, #tpu.memory_space<vmem>>, %arg5: memref<2x1x8x9xf32, #tpu.memory_space<vmem>>) attributes {dimension_semantics = [#tpu.dimension_semantics<parallel>, #tpu.dimension_semantics<parallel>, #tpu.dimension_semantics<parallel>], iteration_bounds = array<i64: 2, 1, 1>, scalar_prefetch = 0 : i64, scratch_operands = 0 : i64, tpu.core_type = #tpu.core_type<tc>, window_params = [{transform_indices = @transform_0, window_bounds = array<i64: 2, 1, 8, 32>}, {transform_indices = @transform_1, window_bounds = array<i64: 1, 9, 32>}, {transform_indices = @transform_2, window_bounds = array<i64: 2, 1, 8, 9>}]} {
    %c0 = arith.constant 0 : index
    %c0_0 = arith.constant 0 : index
    %c0_1 = arith.constant 0 : index
    %c0_2 = arith.constant 0 : index
    %0 = vector.load %arg3[%c0, %c0_0, %c0_1, %c0_2] : memref<2x1x8x32xbf16, #tpu.memory_space<vmem>>, vector<2x1x8x32xbf16>
    %1 = vector.shape_cast %0 : vector<2x1x8x32xbf16> to vector<2x8x32xbf16>
    %2 = vector.shape_cast %1 : vector<2x8x32xbf16> to vector<16x32xbf16>
    %c0_3 = arith.constant 0 : index
    %c0_4 = arith.constant 0 : index
    %c0_5 = arith.constant 0 : index
    %3 = vector.load %arg4[%c0_3, %c0_4, %c0_5] : memref<1x9x32xbf16, #tpu.memory_space<vmem>>, vector<1x9x32xbf16>
    %4 = vector.shape_cast %3 : vector<1x9x32xbf16> to vector<9x32xbf16>
    %cst = arith.constant dense<0.000000e+00> : vector<16x9xf32>
    %5 = tpu.matmul %2, %4, %cst {dimension_numbers = #tpu.dot_dimension_numbers<[1], [1], [0], [0], [0, 0, 1, 0], [], []>} : vector<16x32xbf16>, vector<9x32xbf16>, vector<16x9xf32> -> vector<16x9xf32>
    %6 = vector.shape_cast %5 : vector<16x9xf32> to vector<2x8x9xf32>
    %c0_6 = arith.constant 0 : index
    %c0_7 = arith.constant 0 : index
    %c0_8 = arith.constant 0 : index
    %c0_9 = arith.constant 0 : index
    %7 = vector.load %arg5[%c0_6, %c0_7, %c0_8, %c0_9] : memref<2x1x8x9xf32, #tpu.memory_space<vmem>>, vector<2x1x8x9xf32>
    %8 = vector.shape_cast %7 : vector<2x1x8x9xf32> to vector<2x8x9xf32>
    %9 = vector.shape_cast %6 : vector<2x8x9xf32> to vector<2x1x8x9xf32>
    tpu.vector_store %arg5[%c0_6, %c0_7, %c0_8, %c0_9], %9 {strides = array<i32>} : memref<2x1x8x9xf32, #tpu.memory_space<vmem>>, vector<2x1x8x9xf32>,
    %cst_10 = arith.constant -1.000000e+02 : f32
    %10 = vector.broadcast %cst_10 : f32 to vector<2x8x1xf32>
    %c0_11 = arith.constant 0 : index
    %c0_12 = arith.constant 0 : index
    %c0_13 = arith.constant 0 : index
    %c8 = arith.constant 8 : index
    %11 = vector.load %arg5[%c0_11, %c0_12, %c0_13, %c8] : memref<2x1x8x9xf32, #tpu.memory_space<vmem>>, vector<2x1x8x1xf32>
    %12 = vector.shape_cast %11 : vector<2x1x8x1xf32> to vector<2x8x1xf32>
    %13 = vector.shape_cast %10 : vector<2x8x1xf32> to vector<2x1x8x1xf32>
    tpu.vector_store %arg5[%c0_11, %c0_12, %c0_13, %c8], %13 {strides = array<i32>} : memref<2x1x8x9xf32, #tpu.memory_space<vmem>>, vector<2x1x8x1xf32>,
    return
  }
  func.func @transform_0(%arg0: i32, %arg1: i32, %arg2: i32) -> (i32, i32, i32, i32) {
    %c0_i32 = arith.constant 0 : i32
    %c0_i32_0 = arith.constant 0 : i32
    return %arg1, %arg0, %arg2, %c0_i32 : i32, i32, i32, i32
  }
  func.func @transform_1(%arg0: i32, %arg1: i32, %arg2: i32) -> (i32, i32, i32) {
    %c0_i32 = arith.constant 0 : i32
    %c0_i32_0 = arith.constant 0 : i32
    %c0_i32_1 = arith.constant 0 : i32
    return %arg0, %c0_i32, %c0_i32_0 : i32, i32, i32
  }
  func.func @transform_2(%arg0: i32, %arg1: i32, %arg2: i32) -> (i32, i32, i32, i32) {
    %c0_i32 = arith.constant 0 : i32
    %c0_i32_0 = arith.constant 0 : i32
    return %arg1, %arg0, %arg2, %c0_i32 : i32, i32, i32, i32
  }
}

</mosaic_0001>

<bundles_post_ra>
// kernel: tpu_custom_call.1
= control target key start
LH: loop header
LB: loop body
LE: loop exit
PB: predicated region body
PF: predicated region fallthrough
CT: control target
= control target key end

     0   :  { %7 = vsyncpa [#allocation4], 0  ;;  %s744_s0 = inlined_call_operand.vmem [shape: bf16[2,2,8,32], index: 0, kind: input, shape index: {}]   ;;  %s745_s1 = inlined_call_operand.vmem [shape: bf16[2,9,32], index: 1, kind: input, shape index: {}]   ;;  %s746_s2 = inlined_call_operand.hbm [shape: f32[2,2,8,9], index: 2, kind: output, shape index: {}]  }
   0x1   :  { %9 = vsyncpa [#allocation4 + $0x1], 0  ;;  %s615_s9 = smov 0   ;;  %s617_s10 = smov 0  }
   0x2   :  { %s619_s11 = smov 0   ;;  %s621_s12 = smov 0  }
   0x3   :  { %s623_s13 = smov 0   ;;  %s625_s14 = smov 0  }
   0x4 LB: > { %s423_s15 = sadd.s32 4294967295, %s591_s14   ;;  %s424_s16 = sadd.s32 4294967294, %s591_s14   ;;  %s591_s14 = sphi %s625_s14, %s15_s14   ;;  %s587_s13 = sphi %s623_s13, %s753_s13   ;;  %s583_s12 = sphi %s621_s12, %s752_s12   ;;  %s579_s11 = sphi %s619_s11, %s751_s11   ;;  %s575_s10 = sphi %s617_s10, %s750_s10   ;;  %s571_s9 = sphi %s615_s9, %s749_s9  }
   0x5   : > { %s34_s17 = sadd.s32 1, %s587_s13  ;;  %s45_s18 = sadd.s32 1, %s579_s11 }
   0x6   : > { %p36_p0 = scmp.ge.s32.totalorder %s34_s17, 2  ;;  %p52_p1 = scmp.ne.s32.totalorder %s579_s11, %s575_s10 }
   0x7   : > { %p53_p2 = scmp.eq.s32.totalorder %s591_s14, 0  ;;  %p112_p3 = scmp.eq.s32.totalorder %s423_s15, 1 }
   0x8   : > { %s755_s17 = smov (%p36_p0, %s34_s17), 0  ;;  %p117_p6 = scmp.ne.s32.totalorder %s575_s10, %s571_s9 }
   0x9   : > { %p54_p4 = por %p53_p2, %p52_p1  ;;  %p654_p5 = por %p112_p3, %p52_p1 }
   0xa   : > { %s39_s20 = ssub.s32 %s587_s13, %s755_s17  ;;  %p118_p8 = scmp.eq.s32.totalorder %s424_s16, 1 }
   0xb   : > { %p43_p7 = scmp.eq.s32.totalorder %s39_s20, 0  ;;  %p426_p10 = scmp.ge.s32.totalorder %s591_s14, 2 }
   0xc   : > { %p665_p9 = por %p118_p8, %p117_p6 }
   0xd   : > { %s663_s21 = scalar_select %p43_p7, %s579_s11, %s45_s18  }
   0xe   : > { %134 = sbr.rel (%p426_p10) target bundleno = 28 (0x1c), region = 16 }
  0x15   : > { %137 = sbr.rel (!%p54_p4) target bundleno = 28 (0x1c), region = 20  ;;  %s139_s23 = sand.u32 (%p54_p4), 1, %s579_s11  }
  0x16   : > { %s428_s24 = sshll.u32 (%p54_p4), %s587_s13, 2  ;;  %s427_s25 = sshll.u32 (%p54_p4), %s139_s23, 3 }
  0x17   : > { %s147_s28 = scalar_lea.vmem (%p54_p4), %s744_s0, %s428_s24  ;;  %s141_s29 = scalar_lea.vmem (%p54_p4), [#allocation2], %s427_s25 }
  0x18   : > { %v163_v0 = vld [vmem:[%s147_s28] sm:$0xf] (%p54_p4)  ;;  %v165_v1 = vld [vmem:[%s147_s28 + $0x8] sm:$0xf] (%p54_p4) }
  0x19   : > { %164 = vst [vmem:[%s141_s29] sm:$0xf] (%p54_p4), %v163_v0  ;;  %166 = vst [vmem:[%s141_s29 + $0x4] sm:$0xf] (%p54_p4), %v165_v1 }
  0x1c PF: > { %p429_p11 = scmp.ge.s32.totalorder %s591_s14, 1  ;;  %p200_p12 = scmp.lt.s32.totalorder %s591_s14, 3 }
  0x1e   : > { %p201_p13 = pnand %p429_p11, %p200_p12 }
  0x1f   : > { %p234_p0 = scmp.lt.s32.totalorder (!%p201_p13), %s583_s12, 1  ;;  %s681_s30 = sand.u32 (!%p201_p13), 1, %s575_s10   ;;  %v593_v2 = vmov (!%p201_p13), 0.0   ;;  %vm594_vm0 = vmmov (!%p201_p13), 0   ;;  %vm255_vm1 = vcmask (!%p201_p13), 261120   ;;  %vm303_vm2 = vcmask (!%p201_p13), 72704  }
  0x20   : > { %204 = sbr.rel (%p201_p13) target bundleno = 283 (0x11b), region = 65  ;;  %444 = vmatprep.subr.bf16.mxu0 (!%p201_p13), %v593_v2  ;;  %446 = vmatprep.mubr.msk.bf16.mxu0 (!%p201_p13), %vm594_vm0, %v593_v2  ;;  %s430_s3 = sshll.u32 (!%p201_p13), %s681_s30, 3  ;;  %vm306_vm3 = vcmask (!%p201_p13), 72768   ;;  %v595_v8 = vmov (!%p201_p13), -100.0  }
  0x21   : > { %s209_s6 = scalar_lea.vmem (!%p201_p13), [#allocation2], %s430_s3  ;;  %s431_s16 = sshll.u32 (!%p201_p13), %s681_s30, 4 }
  0x22   : > { %v512_v5 = vld [vmem:[%s209_s6] sm:$0xff] (!%p201_p13)   ;;  %s232_s18 = scalar_lea.vmem (!%p201_p13), [#allocation3], %s431_s16  ;;  %s438_s23 = sshll.u32 (!%p201_p13), %s583_s12, 7 }
  0x23   : > { %s326_s20 = sshll.u32 (!%p201_p13), %s232_s18, 4  ;;  %s695_s26 = scalar_lea.hbm (!%p201_p13), %s746_s2, %s438_s23  ;;  %s690_s20 = int_to_ptr.vmem [resolvable:$true] %s326_s20 }
  0x24   : > { %s513_s27 = scalar_lea.vmem (!%p201_p13), %s690_s20, 256  ;;  %s596_s28 = smov (!%p201_p13), [#allocation3]  }
  0x25   : > { %p514_p1 = scmp.ne.s32.totalorder (!%p201_p13), %s690_s20, %s513_s27  ;;  %s517_s29 = sshll.u32 (!%p201_p13), %s596_s28, 4  ;;  %s518_s29 = int_to_ptr.vmem [resolvable:$false] %s517_s29 }
  0x26   : > { %s519_s3 = scalar_lea.vmem (!%p201_p13), %s518_s29, 512  ;;  %p520_p4 = scmp.lt.s32.totalorder (!%p201_p13), %s690_s20, %s518_s29 }
  0x27   : > { %s235_s4 = scalar_select %p234_p0, %s583_s12, 1 }
  0x28   : > { %s310_s12 = scalar_lea.sflag [#allocation4], %s681_s30  ;;  %p515_p2 = pnand %p514_p1, %p654_p5 }
  0x29   : > { %s441_s5 = sshll.u32 %s235_s4, 3  ;;  %p521_p6 = scmp.lt.s32.totalorder %s519_s3, %s513_s27 }
  0x2a   : > { %s238_s15 = scalar_lea.vmem %s745_s1, %s441_s5  ;;  %p516_p3 = pneg %p515_p2 }
  0x2b   : > { %v511_v3 = vld [vmem:[%s238_s15] sm:$0x1f]   ;;  %p522_p7 = por %p521_p6, %p520_p4 }
  0x2c   : > { %v260_v4 = vsel %vm255_vm1, %v511_v3, 0 }
  0x2d   : > { %445 = vmatpush3.bf16.xpose.msra.mxu0 %v260_v4  ;;  %p523_p8 = pnand %p522_p7, %p516_p3 }
  0x34   : > { %447 = vmatmul.mubr.msk.bf16.vlgmr.msra.gmra.mrb[0].mxu0 %vm255_vm1, %v512_v5 }
 0x107   : > { %v296_v6 = vpop.f32.mrb[0].mxu0 }
 0x108   : > { %304 = vst.msk [vmem:[%s232_s18] sm:$0xff] %vm303_vm2, %v296_v6  ;;  %v448_v7 = vpop.f32.mrb[1].mxu0 }
 0x109   : > { %307 = vst.msk [vmem:[%s232_s18] sm:$0xff] %vm306_vm3, %v595_v8  ;;  %v299_v9 = vpop.f32.mrb[2].mxu0 }
 0x10a   : > { %305 = vst.msk [vmem:[%s232_s18 + $0x8] sm:$0xff] %vm303_vm2, %v299_v9  ;;  %v449_v10 = vpop.f32.mrb[3].mxu0 }
 0x10b   : > { %308 = vst.msk [vmem:[%s232_s18 + $0x8] sm:$0xff] %vm306_vm3, %v595_v8 }
 0x10c   : > { %526 = shalt.err (!%p523_p8)
}
 0x10d   : > { %s527_s4 = scalar_lea.hbm %s695_s26, 256  ;;  %s531_s7 = scalar_lea.hbm %s746_s2, 512 }
 0x10e   : > { %p528_p11 = scmp.ne.s32.totalorder %s695_s26, %s527_s4  ;;  %p532_p0 = scmp.lt.u32.totalorder %s695_s26, %s746_s2 }
 0x10f   : > { %p533_p1 = scmp.lt.u32.totalorder %s531_s7, %s527_s4  ;;  %p535_p3 = scmp.lt.u32.totalorder %s527_s4, %s695_s26 }
 0x110   : > { %p529_p12 = pnand %p528_p11, %p654_p5 }
 0x111   : > { %p534_p2 = por %p533_p1, %p532_p0 }
 0x112   : > { %p530_p13 = pneg %p529_p12 }
 0x113   : > { %p536_p4 = por %p535_p3, %p534_p2 }
 0x115   : > { %p537_p6 = pnand %p536_p4, %p530_p13 }
 0x117   : > { %540 = shalt.err (!%p537_p6)
}
 0x118   : > { %s597_s16 = smov 128   ;;  %s598_s18 = smov 256  }
 0x119   : > { %s599_s23 = smov 8  }
 0x11a   : > { %450 = dma.vmem_to_hbm [thread:$0]  (%p654_p5), %s690_s20, 256, %s695_s26, %s310_s12, %s597_s16, %s598_s18, %s599_s23  }
 0x11b PF: > { %s341_s24 = sand.u32 1, %s571_s9   ;;  %p453_p7 = pnand %p426_p10, %p665_p9 }
 0x11c   : > { %s342_s25 = scalar_lea.sflag [#allocation4], %s341_s24 }
 0x11d   : > { %566 = dma.done.wait (!%p453_p7), %s342_s25, 256  }
 0x11e   : > { %568 = vsyncadd (!%p453_p7), %s342_s25, 4294967040  ;;  %s15_s14 = sadd.s32 1, %s591_s14   ;;  %s749_s9 = smov %s575_s10 }
 0x11f   : > { %p12_p8 = scmp.ge.s32.totalorder %s15_s14, 4   ;;  %s750_s10 = smov %s579_s11 }
 0x120   : > { %s751_s11 = smov %s663_s21  ;;  %s752_s12 = smov %s587_s13 }
 0x121   : > { %s753_s13 = smov %s755_s17  ;;  %14 = sbr.rel (!%p12_p8) target bundleno = 4 (0x4), region = 112 }
 0x128   :  { %347 = vsyncpa [#allocation4], 1 }
 0x129   :  { %349 = vsyncpa [#allocation4 + $0x1], 1 }

</bundles_post_ra>
